<compile_context>
chip_gen: v7x
topology: tpu7x:2x2x1
jax: 0.10.0
libtpu: 0.0.40
codegen_flags: <defaults>
</compile_context>

<pallas_src>
import jax
import jax.numpy as jnp
import numpy as np
from jax.experimental import pallas as pl
from jax.experimental.pallas import tpu as pltpu


LANE = 128          # TPU vreg lane width
SUBLANE_PAD = 16    # bf16 sublane packing (covers f32's 8 as well)
NEG_BIG = -1e30     # finite "minus infinity" in f32 (keeps max/exp NaN-free)


def _round_up(x, m):
    return (x + m - 1) // m * m


def clf_head_loss_kernel(feat_ref, w1_ref, b1_ref, w2_ref, b2_ref, lbl_ref, out_ref):
    """One batch tile of the classification head + log_softmax + per-row NLL.

    feat_ref: (tb, hidden)      bf16  CLS-token features
    w1_ref:   (hidden, hidden)  bf16  dense weight (in, out), resident
    b1_ref:   (1, hidden)       f32   resident
    w2_ref:   (hidden, lanep)   bf16  out_proj weight, lane-padded with zeros, resident
    b2_ref:   (1, lanep)        f32   real biases in [:n_labels], NEG_BIG in padded lanes
    lbl_ref:  (tb, 1)           i32   labels (negative => ignored => zero contribution)
    out_ref:  (tb, lanep)       f32   cols [:n_labels] = logits, col lanep-1 = per-row NLL
    """
    # dense -> tanh  (dropout layers are identity: forward() calls self.eval())
    h = jnp.tanh(
        jnp.dot(feat_ref[...], w1_ref[...], preferred_element_type=jnp.float32)
        + b1_ref[...]
    )

    # out_proj -> lane-padded logits. Padded lanes land at NEG_BIG via the baked bias
    # (w2 pad columns are zero), so no per-tile column mask is needed below.
    logits = jnp.dot(h.astype(w2_ref.dtype), w2_ref[...],
                     preferred_element_type=jnp.float32) + b2_ref[...]

    # numerically-stable log_softmax; exp(NEG_BIG - m) == 0 so pad lanes drop out exactly
    m = jnp.max(logits, axis=-1, keepdims=True)
    shifted = logits - m
    lse = jnp.log(jnp.sum(jnp.exp(shifted), axis=-1, keepdims=True))
    lprobs = shifted - lse

    # per-row NLL via in-kernel label compare (replaces the streamed one-hot);
    # negative (ignored) labels never match a column -> exact zero contribution.
    col = jax.lax.broadcasted_iota(jnp.int32, logits.shape, 1)
    picked = jnp.where(col == lbl_ref[...], lprobs, 0.0)
    nll = -jnp.sum(picked, axis=-1, keepdims=True)            # (tb, 1)

    # Fold the per-row NLL into the spare last padded lane -> one lane-dense store.
    out_ref[...] = jnp.where(col == (logits.shape[-1] - 1), nll, logits)


def _choose_batch_tile(bsz, block_bsz):
    """Sublane-aligned batch tile: big enough to amortize per-grid-step overhead, but
    capped so the 'parallel' batch axis keeps >= 2 blocks when the batch allows it
    (v7x has 2 TensorCores sharding the parallel axis)."""
    tb = _round_up(min(block_bsz, max(bsz, 1)), SUBLANE_PAD)
    if bsz > SUBLANE_PAD:
        tb = min(tb, _round_up((bsz + 1) // 2, SUBLANE_PAD))
    return tb


def xlmr_clf_forward(cls_features, w_dense, b_dense, w_out, b_out, labels,
                     *, block_bsz=256):
    """Fused classification-head + loss Pallas kernel (batch-gridded).

    Returns (logits_f32[bsz, n_labels], loss_scalar_f32).
    """
    bsz, hidden = cls_features.shape
    n_labels = w_out.shape[1]
    lanep = _round_up(n_labels + 1, LANE)   # +1 guarantees a spare lane for the per-row NLL

    tb = _choose_batch_tile(bsz, block_bsz)
    n_blocks = pl.cdiv(bsz, tb)

    # bf16 activations/weights feed the MXU; f32 biases & accumulation. No full-batch
    # pad/copy in the wrapper: the cast is a no-op when the encoder already emits bf16 and
    # the batch tail is handled by Pallas' partial-block clipping (edge rows never hit HBM).
    feat = cls_features.astype(jnp.bfloat16)
    w1 = w_dense.astype(jnp.bfloat16)
    b1 = b_dense.astype(jnp.float32).reshape(1, hidden)
    w2 = jnp.zeros((hidden, lanep), jnp.bfloat16).at[:, :n_labels].set(
        w_out.astype(jnp.bfloat16))
    # Bake the pad-column mask into the bias: padded lanes get NEG_BIG (w2 pad cols are 0,
    # so pad logits == NEG_BIG exactly) -> no iota/compare/select over columns in-kernel.
    b2 = jnp.full((1, lanep), NEG_BIG, jnp.float32).at[:, :n_labels].set(
        b_out.astype(jnp.float32).reshape(1, n_labels))
    lbl = labels.astype(jnp.int32).reshape(bsz, 1)

    def build(single_buffer_weights):
        def resident(shape):
            if single_buffer_weights:
                # constant index_map -> block never changes; single-buffer it (VMEM headroom)
                return pl.BlockSpec(shape, lambda i: (0, 0),
                                    pipeline_mode=pl.Buffered(1))
            return pl.BlockSpec(shape, lambda i: (0, 0))

        return pl.pallas_call(
            clf_head_loss_kernel,
            grid=(n_blocks,),
            in_specs=[
                pl.BlockSpec((tb, hidden), lambda i: (i, 0)),   # feat (tiled over batch)
                resident((hidden, hidden)),                     # w1  (resident)
                resident((1, hidden)),                          # b1  (resident)
                resident((hidden, lanep)),                      # w2  (resident, lane-padded)
                resident((1, lanep)),                           # b2  (resident, mask baked in)
                pl.BlockSpec((tb, 1), lambda i: (i, 0)),        # labels (tiny i32 column)
            ],
            out_specs=pl.BlockSpec((tb, lanep), lambda i: (i, 0)),
            out_shape=jax.ShapeDtypeStruct((bsz, lanep), jnp.float32),
            compiler_params=pltpu.CompilerParams(
                dimension_semantics=("parallel",)),
        )

    try:
        out = build(True)(feat, w1, b1, w2, b2, lbl)
    except Exception:
        # Fallback for Pallas builds without BlockSpec(pipeline_mode=...) support.
        out = build(False)(feat, w1, b1, w2, b2, lbl)

    logits = out[:, :n_labels]
    loss = jnp.sum(out[:, lanep - 1])   # ignored-label rows contribute exactly 0
    return logits, loss


def make_params(key, vocab, hidden, n_labels, head_init_range=0.04):
    """Deterministic parameter init matching the nn.Module __init__ shapes."""
    k_emb, k_w1, k_b1, k_w2, k_b2 = jax.random.split(key, 5)
    emb = jax.random.normal(k_emb, (vocab, hidden), jnp.float32) * 0.02
    lim1 = 1.0 / np.sqrt(hidden)
    w_dense = jax.random.uniform(k_w1, (hidden, hidden), jnp.float32, -lim1, lim1)
    b_dense = jax.random.uniform(k_b1, (hidden,), jnp.float32, -lim1, lim1)
    w_out = jax.random.normal(k_w2, (hidden, n_labels), jnp.float32) * head_init_range
    b_out = jax.random.uniform(k_b2, (n_labels,), jnp.float32, -lim1, lim1)
    return emb, w_dense, b_dense, w_out, b_out


if __name__ == "__main__":
    bsz, seq, hidden, n_labels, vocab = 2, 8, 32, 4, 64

    key = jax.random.PRNGKey(0)
    k_params, k_ids, k_lbl = jax.random.split(key, 3)

    emb, w_dense, b_dense, w_out, b_out = make_params(k_params, vocab, hidden, n_labels)

    inputs_ids = jax.random.randint(k_ids, (bsz, seq), 0, vocab, jnp.int32)
    labels = jax.random.randint(k_lbl, (bsz,), 0, n_labels, jnp.int32)

    # TODO(synk): the pretrained fairseq XLM-R transformer stack needs its checkpoint; a
    # deterministic embedding lookup stands in for the backbone.  Only the CLS-token rows are
    # gathered (the (bsz, seq, hidden) tensor is never materialized) and they are emitted in bf16.
    cls_features = jnp.take(emb, inputs_ids[:, 0], axis=0).astype(jnp.bfloat16)  # (bsz, hidden)

    logits, loss = xlmr_clf_forward(cls_features, w_dense, b_dense, w_out, b_out, labels)
    jax.block_until_ready((logits, loss))

    # Pure-JAX reference mirroring the kernel's dtype decisions (bf16 MXU inputs, f32 accum)
    h_ref = jnp.tanh(
        jnp.dot(cls_features, w_dense.astype(jnp.bfloat16),
                preferred_element_type=jnp.float32) + b_dense)
    logits_ref = jnp.dot(h_ref.astype(jnp.bfloat16), w_out.astype(jnp.bfloat16),
                         preferred_element_type=jnp.float32) + b_out
    lprobs_ref = jax.nn.log_softmax(logits_ref.astype(jnp.float32), axis=-1)
    loss_ref = -jnp.sum(lprobs_ref[jnp.arange(bsz), labels])

    assert np.allclose(np.asarray(logits), np.asarray(logits_ref),
                       atol=2e-3, rtol=2e-3), "logits mismatch"
    assert np.allclose(np.asarray(loss), np.asarray(loss_ref),
                       atol=2e-3, rtol=2e-3), "loss mismatch"

    print("KERNEL_OK")
</pallas_src>

<mosaic_0001>
module attributes {stable_mosaic.version = 11 : i64} {
  func.func @clf_head_loss_kernel(%arg0: i32, %arg1: memref<16x32xbf16, #tpu.memory_space<vmem>>, %arg2: memref<32x32xbf16, #tpu.memory_space<vmem>>, %arg3: memref<1x32xf32, #tpu.memory_space<vmem>>, %arg4: memref<32x128xbf16, #tpu.memory_space<vmem>>, %arg5: memref<1x128xf32, #tpu.memory_space<vmem>>, %arg6: memref<16x1xi32, #tpu.memory_space<vmem>>, %arg7: memref<16x128xf32, #tpu.memory_space<vmem>>) attributes {dimension_semantics = [#tpu.dimension_semantics<parallel>], iteration_bounds = array<i64: 1>, scalar_prefetch = 0 : i64, scratch_operands = 0 : i64, tpu.core_type = #tpu.core_type<tc>, window_params = [{transform_indices = @transform_0, window_bounds = array<i64: 16, 32>}, {pipeline_mode = #tpu.pipeline_mode<synchronous>, transform_indices = @transform_1, window_bounds = array<i64: 32, 32>}, {pipeline_mode = #tpu.pipeline_mode<synchronous>, transform_indices = @transform_2, window_bounds = array<i64: 1, 32>}, {pipeline_mode = #tpu.pipeline_mode<synchronous>, transform_indices = @transform_3, window_bounds = array<i64: 32, 128>}, {pipeline_mode = #tpu.pipeline_mode<synchronous>, transform_indices = @transform_4, window_bounds = array<i64: 1, 128>}, {transform_indices = @transform_5, window_bounds = array<i64: 16, 1>}, {transform_indices = @transform_6, window_bounds = array<i64: 16, 128>}]} {
    %c0 = arith.constant 0 : index
    %c0_0 = arith.constant 0 : index
    %0 = vector.load %arg1[%c0, %c0_0] : memref<16x32xbf16, #tpu.memory_space<vmem>>, vector<16x32xbf16>
    %c0_1 = arith.constant 0 : index
    %c0_2 = arith.constant 0 : index
    %1 = vector.load %arg2[%c0_1, %c0_2] : memref<32x32xbf16, #tpu.memory_space<vmem>>, vector<32x32xbf16>
    %cst = arith.constant dense<0.000000e+00> : vector<16x32xf32>
    %2 = tpu.matmul %0, %1, %cst {dimension_numbers = #tpu.dot_dimension_numbers<[1], [0], [0], [1], [0, 0, 1, 1], [], []>} : vector<16x32xbf16>, vector<32x32xbf16>, vector<16x32xf32> -> vector<16x32xf32>
    %c0_3 = arith.constant 0 : index
    %c0_4 = arith.constant 0 : index
    %3 = vector.load %arg3[%c0_3, %c0_4] : memref<1x32xf32, #tpu.memory_space<vmem>>, vector<1x32xf32>
    %4 = vector.broadcast %3 : vector<1x32xf32> to vector<16x32xf32>
    %5 = arith.addf %2, %4 : vector<16x32xf32>
    %6 = math.tanh %5 : vector<16x32xf32>
    %7 = arith.truncf %6 : vector<16x32xf32> to vector<16x32xbf16>
    %c0_5 = arith.constant 0 : index
    %c0_6 = arith.constant 0 : index
    %8 = vector.load %arg4[%c0_5, %c0_6] : memref<32x128xbf16, #tpu.memory_space<vmem>>, vector<32x128xbf16>
    %cst_7 = arith.constant dense<0.000000e+00> : vector<16x128xf32>
    %9 = tpu.matmul %7, %8, %cst_7 {dimension_numbers = #tpu.dot_dimension_numbers<[1], [0], [0], [1], [0, 0, 1, 1], [], []>} : vector<16x32xbf16>, vector<32x128xbf16>, vector<16x128xf32> -> vector<16x128xf32>
    %c0_8 = arith.constant 0 : index
    %c0_9 = arith.constant 0 : index
    %10 = vector.load %arg5[%c0_8, %c0_9] : memref<1x128xf32, #tpu.memory_space<vmem>>, vector<1x128xf32>
    %11 = vector.broadcast %10 : vector<1x128xf32> to vector<16x128xf32>
    %12 = arith.addf %9, %11 : vector<16x128xf32>
    %cst_10 = arith.constant dense<0xFF800000> : vector<16xf32>
    %13 = vector.multi_reduction <maximumf>, %12, %cst_10 [1] : vector<16x128xf32> to vector<16xf32>
    %14 = vector.shape_cast %13 : vector<16xf32> to vector<16x1xf32>
    %15 = vector.broadcast %14 : vector<16x1xf32> to vector<16x128xf32>
    %16 = arith.subf %12, %15 : vector<16x128xf32>
    %17 = math.exp %16 : vector<16x128xf32>
    %cst_11 = arith.constant dense<0.000000e+00> : vector<16xf32>
    %18 = vector.multi_reduction <add>, %17, %cst_11 [1] : vector<16x128xf32> to vector<16xf32>
    %19 = vector.shape_cast %18 : vector<16xf32> to vector<16x1xf32>
    %20 = math.log %19 : vector<16x1xf32>
    %21 = vector.broadcast %20 : vector<16x1xf32> to vector<16x128xf32>
    %22 = arith.subf %16, %21 : vector<16x128xf32>
    %23 = tpu.iota {dimensions = array<i32: 1>} : vector<16x128xi32>
    %c0_12 = arith.constant 0 : index
    %c0_13 = arith.constant 0 : index
    %24 = vector.load %arg6[%c0_12, %c0_13] : memref<16x1xi32, #tpu.memory_space<vmem>>, vector<16x1xi32>
    %25 = vector.broadcast %24 : vector<16x1xi32> to vector<16x128xi32>
    %26 = arith.cmpi eq, %23, %25 : vector<16x128xi32>
    %cst_14 = arith.constant 0.000000e+00 : f32
    %27 = vector.broadcast %cst_14 : f32 to vector<16x128xf32>
    %28 = arith.select %26, %22, %27 : vector<16x128xi1>, vector<16x128xf32>
    %cst_15 = arith.constant dense<0.000000e+00> : vector<16xf32>
    %29 = vector.multi_reduction <add>, %28, %cst_15 [1] : vector<16x128xf32> to vector<16xf32>
    %30 = vector.shape_cast %29 : vector<16xf32> to vector<16x1xf32>
    %cst_16 = arith.constant 0.000000e+00 : f32
    %31 = vector.broadcast %cst_16 : f32 to vector<16x1xf32>
    %32 = arith.subf %31, %30 : vector<16x1xf32>
    %c127_i32 = arith.constant 127 : i32
    %33 = vector.broadcast %c127_i32 : i32 to vector<16x128xi32>
    %34 = arith.cmpi eq, %23, %33 : vector<16x128xi32>
    %35 = vector.shape_cast %32 : vector<16x1xf32> to vector<16x1xf32>
    %36 = vector.broadcast %35 : vector<16x1xf32> to vector<16x128xf32>
    %37 = arith.select %34, %36, %12 : vector<16x128xi1>, vector<16x128xf32>
    %c0_17 = arith.constant 0 : index
    %c0_18 = arith.constant 0 : index
    %38 = vector.load %arg7[%c0_17, %c0_18] : memref<16x128xf32, #tpu.memory_space<vmem>>, vector<16x128xf32>
    tpu.vector_store %arg7[%c0_17, %c0_18], %37 {strides = array<i32>} : memref<16x128xf32, #tpu.memory_space<vmem>>, vector<16x128xf32>,
    return
  }
  func.func @transform_0(%arg0: i32) -> (i32, i32) {
    %c0_i32 = arith.constant 0 : i32
    %c0_i32_0 = arith.constant 0 : i32
    return %arg0, %c0_i32 : i32, i32
  }
  func.func @transform_1(%arg0: i32) -> (i32, i32) {
    %c0_i32 = arith.constant 0 : i32
    %c0_i32_0 = arith.constant 0 : i32
    %c0_i32_1 = arith.constant 0 : i32
    return %c0_i32, %c0_i32_0 : i32, i32
  }
  func.func @transform_2(%arg0: i32) -> (i32, i32) {
    %c0_i32 = arith.constant 0 : i32
    %c0_i32_0 = arith.constant 0 : i32
    %c0_i32_1 = arith.constant 0 : i32
    return %c0_i32, %c0_i32_0 : i32, i32
  }
  func.func @transform_3(%arg0: i32) -> (i32, i32) {
    %c0_i32 = arith.constant 0 : i32
    %c0_i32_0 = arith.constant 0 : i32
    %c0_i32_1 = arith.constant 0 : i32
    return %c0_i32, %c0_i32_0 : i32, i32
  }
  func.func @transform_4(%arg0: i32) -> (i32, i32) {
    %c0_i32 = arith.constant 0 : i32
    %c0_i32_0 = arith.constant 0 : i32
    %c0_i32_1 = arith.constant 0 : i32
    return %c0_i32, %c0_i32_0 : i32, i32
  }
  func.func @transform_5(%arg0: i32) -> (i32, i32) {
    %c0_i32 = arith.constant 0 : i32
    %c0_i32_0 = arith.constant 0 : i32
    return %arg0, %c0_i32 : i32, i32
  }
  func.func @transform_6(%arg0: i32) -> (i32, i32) {
    %c0_i32 = arith.constant 0 : i32
    %c0_i32_0 = arith.constant 0 : i32
    return %arg0, %c0_i32 : i32, i32
  }
}

module attributes {stable_mosaic.version = 11 : i64} {
  func.func @clf_head_loss_kernel(%arg0: i32, %arg1: memref<16x32xbf16, #tpu.memory_space<vmem>>, %arg2: memref<32x32xbf16, #tpu.memory_space<vmem>>, %arg3: memref<1x32xf32, #tpu.memory_space<vmem>>, %arg4: memref<32x128xbf16, #tpu.memory_space<vmem>>, %arg5: memref<1x128xf32, #tpu.memory_space<vmem>>, %arg6: memref<16x1xi32, #tpu.memory_space<vmem>>, %arg7: memref<16x128xf32, #tpu.memory_space<vmem>>) attributes {dimension_semantics = [#tpu.dimension_semantics<parallel>], iteration_bounds = array<i64: 1>, scalar_prefetch = 0 : i64, scratch_operands = 0 : i64, tpu.core_type = #tpu.core_type<tc>, window_params = [{transform_indices = @transform_0, window_bounds = array<i64: 16, 32>}, {pipeline_mode = #tpu.pipeline_mode<synchronous>, transform_indices = @transform_1, window_bounds = array<i64: 32, 32>}, {pipeline_mode = #tpu.pipeline_mode<synchronous>, transform_indices = @transform_2, window_bounds = array<i64: 1, 32>}, {pipeline_mode = #tpu.pipeline_mode<synchronous>, transform_indices = @transform_3, window_bounds = array<i64: 32, 128>}, {pipeline_mode = #tpu.pipeline_mode<synchronous>, transform_indices = @transform_4, window_bounds = array<i64: 1, 128>}, {transform_indices = @transform_5, window_bounds = array<i64: 16, 1>}, {transform_indices = @transform_6, window_bounds = array<i64: 16, 128>}]} {
    %c0 = arith.constant 0 : index
    %c0_0 = arith.constant 0 : index
    %0 = vector.load %arg1[%c0, %c0_0] : memref<16x32xbf16, #tpu.memory_space<vmem>>, vector<16x32xbf16>
    %c0_1 = arith.constant 0 : index
    %c0_2 = arith.constant 0 : index
    %1 = vector.load %arg2[%c0_1, %c0_2] : memref<32x32xbf16, #tpu.memory_space<vmem>>, vector<32x32xbf16>
    %cst = arith.constant dense<0.000000e+00> : vector<16x32xf32>
    %2 = tpu.matmul %0, %1, %cst {dimension_numbers = #tpu.dot_dimension_numbers<[1], [0], [0], [1], [0, 0, 1, 1], [], []>} : vector<16x32xbf16>, vector<32x32xbf16>, vector<16x32xf32> -> vector<16x32xf32>
    %c0_3 = arith.constant 0 : index
    %c0_4 = arith.constant 0 : index
    %3 = vector.load %arg3[%c0_3, %c0_4] : memref<1x32xf32, #tpu.memory_space<vmem>>, vector<1x32xf32>
    %4 = vector.broadcast %3 : vector<1x32xf32> to vector<16x32xf32>
    %5 = arith.addf %2, %4 : vector<16x32xf32>
    %6 = math.tanh %5 : vector<16x32xf32>
    %7 = arith.truncf %6 : vector<16x32xf32> to vector<16x32xbf16>
    %c0_5 = arith.constant 0 : index
    %c0_6 = arith.constant 0 : index
    %8 = vector.load %arg4[%c0_5, %c0_6] : memref<32x128xbf16, #tpu.memory_space<vmem>>, vector<32x128xbf16>
    %cst_7 = arith.constant dense<0.000000e+00> : vector<16x128xf32>
    %9 = tpu.matmul %7, %8, %cst_7 {dimension_numbers = #tpu.dot_dimension_numbers<[1], [0], [0], [1], [0, 0, 1, 1], [], []>} : vector<16x32xbf16>, vector<32x128xbf16>, vector<16x128xf32> -> vector<16x128xf32>
    %c0_8 = arith.constant 0 : index
    %c0_9 = arith.constant 0 : index
    %10 = vector.load %arg5[%c0_8, %c0_9] : memref<1x128xf32, #tpu.memory_space<vmem>>, vector<1x128xf32>
    %11 = vector.broadcast %10 : vector<1x128xf32> to vector<16x128xf32>
    %12 = arith.addf %9, %11 : vector<16x128xf32>
    %cst_10 = arith.constant dense<0xFF800000> : vector<16xf32>
    %13 = vector.multi_reduction <maximumf>, %12, %cst_10 [1] : vector<16x128xf32> to vector<16xf32>
    %14 = vector.shape_cast %13 : vector<16xf32> to vector<16x1xf32>
    %15 = vector.broadcast %14 : vector<16x1xf32> to vector<16x128xf32>
    %16 = arith.subf %12, %15 : vector<16x128xf32>
    %17 = math.exp %16 : vector<16x128xf32>
    %cst_11 = arith.constant dense<0.000000e+00> : vector<16xf32>
    %18 = vector.multi_reduction <add>, %17, %cst_11 [1] : vector<16x128xf32> to vector<16xf32>
    %19 = vector.shape_cast %18 : vector<16xf32> to vector<16x1xf32>
    %20 = math.log %19 : vector<16x1xf32>
    %21 = vector.broadcast %20 : vector<16x1xf32> to vector<16x128xf32>
    %22 = arith.subf %16, %21 : vector<16x128xf32>
    %23 = tpu.iota {dimensions = array<i32: 1>} : vector<16x128xi32>
    %c0_12 = arith.constant 0 : index
    %c0_13 = arith.constant 0 : index
    %24 = vector.load %arg6[%c0_12, %c0_13] : memref<16x1xi32, #tpu.memory_space<vmem>>, vector<16x1xi32>
    %25 = vector.broadcast %24 : vector<16x1xi32> to vector<16x128xi32>
    %26 = arith.cmpi eq, %23, %25 : vector<16x128xi32>
    %cst_14 = arith.constant 0.000000e+00 : f32
    %27 = vector.broadcast %cst_14 : f32 to vector<16x128xf32>
    %28 = arith.select %26, %22, %27 : vector<16x128xi1>, vector<16x128xf32>
    %cst_15 = arith.constant dense<0.000000e+00> : vector<16xf32>
    %29 = vector.multi_reduction <add>, %28, %cst_15 [1] : vector<16x128xf32> to vector<16xf32>
    %30 = vector.shape_cast %29 : vector<16xf32> to vector<16x1xf32>
    %cst_16 = arith.constant 0.000000e+00 : f32
    %31 = vector.broadcast %cst_16 : f32 to vector<16x1xf32>
    %32 = arith.subf %31, %30 : vector<16x1xf32>
    %c127_i32 = arith.constant 127 : i32
    %33 = vector.broadcast %c127_i32 : i32 to vector<16x128xi32>
    %34 = arith.cmpi eq, %23, %33 : vector<16x128xi32>
    %35 = vector.shape_cast %32 : vector<16x1xf32> to vector<16x1xf32>
    %36 = vector.broadcast %35 : vector<16x1xf32> to vector<16x128xf32>
    %37 = arith.select %34, %36, %12 : vector<16x128xi1>, vector<16x128xf32>
    %c0_17 = arith.constant 0 : index
    %c0_18 = arith.constant 0 : index
    %38 = vector.load %arg7[%c0_17, %c0_18] : memref<16x128xf32, #tpu.memory_space<vmem>>, vector<16x128xf32>
    tpu.vector_store %arg7[%c0_17, %c0_18], %37 {strides = array<i32>} : memref<16x128xf32, #tpu.memory_space<vmem>>, vector<16x128xf32>,
    return
  }
  func.func @transform_0(%arg0: i32) -> (i32, i32) {
    %c0_i32 = arith.constant 0 : i32
    %c0_i32_0 = arith.constant 0 : i32
    return %arg0, %c0_i32 : i32, i32
  }
  func.func @transform_1(%arg0: i32) -> (i32, i32) {
    %c0_i32 = arith.constant 0 : i32
    %c0_i32_0 = arith.constant 0 : i32
    %c0_i32_1 = arith.constant 0 : i32
    return %c0_i32, %c0_i32_0 : i32, i32
  }
  func.func @transform_2(%arg0: i32) -> (i32, i32) {
    %c0_i32 = arith.constant 0 : i32
    %c0_i32_0 = arith.constant 0 : i32
    %c0_i32_1 = arith.constant 0 : i32
    return %c0_i32, %c0_i32_0 : i32, i32
  }
  func.func @transform_3(%arg0: i32) -> (i32, i32) {
    %c0_i32 = arith.constant 0 : i32
    %c0_i32_0 = arith.constant 0 : i32
    %c0_i32_1 = arith.constant 0 : i32
    return %c0_i32, %c0_i32_0 : i32, i32
  }
  func.func @transform_4(%arg0: i32) -> (i32, i32) {
    %c0_i32 = arith.constant 0 : i32
    %c0_i32_0 = arith.constant 0 : i32
    %c0_i32_1 = arith.constant 0 : i32
    return %c0_i32, %c0_i32_0 : i32, i32
  }
  func.func @transform_5(%arg0: i32) -> (i32, i32) {
    %c0_i32 = arith.constant 0 : i32
    %c0_i32_0 = arith.constant 0 : i32
    return %arg0, %c0_i32 : i32, i32
  }
  func.func @transform_6(%arg0: i32) -> (i32, i32) {
    %c0_i32 = arith.constant 0 : i32
    %c0_i32_0 = arith.constant 0 : i32
    return %arg0, %c0_i32 : i32, i32
  }
}

</mosaic_0001>

<bundles_post_ra>
// kernel: tpu_custom_call.1
= control target key start
LH: loop header
LB: loop body
LE: loop exit
PB: predicated region body
PF: predicated region fallthrough
CT: control target
= control target key end

     0   :  { %11 = vsyncpa [#allocation3], 0  ;;  %s572_s0 = inlined_call_operand.vmem [shape: bf16[2,32], index: 0, kind: input, shape index: {}]   ;;  %s573_s1 = inlined_call_operand.hbm [shape: bf16[32,32], index: 1, kind: input, shape index: {}]   ;;  %s574_s2 = inlined_call_operand.vmem [shape: f32[1,32], index: 2, kind: input, shape index: {}]   ;;  %s575_s3 = inlined_call_operand.hbm [shape: bf16[32,128], index: 3, kind: input, shape index: {}]   ;;  %s576_s4 = inlined_call_operand.vmem [shape: f32[1,128], index: 4, kind: input, shape index: {}]   ;;  %s577_s5 = inlined_call_operand.vmem [shape: s32[2,1], index: 5, kind: input, shape index: {}]   ;;  %s578_s6 = inlined_call_operand.hbm [shape: f32[2,128], index: 6, kind: output, shape index: {}]  }
   0x1   :  { %12 = vsyncpa [#allocation6], 0 }
   0x2   :  { %13 = vsyncpa [#allocation4], 0  ;;  %s450_s21 = smov [#allocation2]   ;;  %s378_s25 = scalar_lea.hbm %s573_s1, 256 }
   0x3   :  { %s21_s22 = sshll.u32 %s450_s21, 4  ;;  %p379_p0 = scmp.ne.s32.totalorder %s573_s1, %s378_s25  ;;  %s22_s22 = int_to_ptr.vmem [resolvable:$true] %s21_s22 }
   0x4   :  { %p382_p1 = scmp.lt.u32.totalorder %s378_s25, %s573_s1 }
   0x6   :  { %p384_p2 = pnand %p382_p1, %p379_p0 }
   0x8   :  { %387 = shalt.err (!%p384_p2)
}
   0x9   :  { %s388_s30 = scalar_lea.vmem %s22_s22, 256  ;;  %p393_p4 = scmp.lt.s32.totalorder %s22_s22, %s22_s22 }
   0xa   :  { %p389_p3 = scmp.ne.s32.totalorder %s22_s22, %s388_s30  ;;  %p394_p5 = scmp.lt.s32.totalorder %s388_s30, %s388_s30 }
   0xc   :  { %p395_p6 = por %p394_p5, %p393_p4 }
   0xe   :  { %p396_p7 = pnand %p395_p6, %p389_p3 }
  0x10   :  { %399 = shalt.err (!%p396_p7)
}
  0x11   :  { %s451_s7 = smov 64   ;;  %s452_s8 = smov 4  }
  0x12   :  { %27 = dma.hbm_to_vmem [thread:$0]  %s573_s1, 256, %s22_s22, [#allocation3], %s451_s7, %s451_s7, %s452_s8  }
  0x13   :  { %s453_s11 = smov [#allocation5]   ;;  %s400_s15 = scalar_lea.hbm %s575_s3, 256 }
  0x14   :  { %s35_s12 = sshll.u32 %s453_s11, 4  ;;  %p401_p8 = scmp.ne.s32.totalorder %s575_s3, %s400_s15  ;;  %s36_s12 = int_to_ptr.vmem [resolvable:$true] %s35_s12 }
  0x15   :  { %p404_p9 = scmp.lt.u32.totalorder %s400_s15, %s575_s3 }
  0x17   :  { %p406_p10 = pnand %p404_p9, %p401_p8 }
  0x19   :  { %409 = shalt.err (!%p406_p10)
}
  0x1a   :  { %s410_s20 = scalar_lea.vmem %s36_s12, 256  ;;  %p415_p12 = scmp.lt.s32.totalorder %s36_s12, %s36_s12 }
  0x1b   :  { %p411_p11 = scmp.ne.s32.totalorder %s36_s12, %s410_s20  ;;  %p416_p13 = scmp.lt.s32.totalorder %s410_s20, %s410_s20 }
  0x1d   :  { %p417_p0 = por %p416_p13, %p415_p12 }
  0x1f   :  { %p418_p1 = pnand %p417_p0, %p411_p11 }
  0x21   :  { %421 = shalt.err (!%p418_p1)
}
  0x22   :  { %41 = dma.hbm_to_vmem [thread:$0]  %s575_s3, 256, %s36_s12, [#allocation6], %s451_s7, %s451_s7, %s452_s8  }
  0x23   :  { %444 = dma.done.wait [#allocation3], 256  }
  0x24   :  { %445 = vsyncadd [#allocation3], 4294967040 }
  0x25   :  { %446 = dma.done.wait [#allocation6], 256  }
  0x26   :  { %447 = vsyncadd [#allocation6], 4294967040  ;;  %v87_v0 = vlaneseq  ;;  %v454_v1 = vmov 0.0   ;;  %vm455_vm0 = vmmov 0   ;;  %v456_v2 = vmov 1966171168  }
  0x27   :  { %333 = vmatprep.subr.bf16.mxu0 %v454_v1  ;;  %337 = vmatprep.mubr.msk.bf16.mxu0 %vm455_vm0, %v454_v1  ;;  %v85_v3 = vunpack.c.l.s4 %v456_v2  ;;  %v362_v6 = vld [vmem:[#allocation2] sm:$0xff]   ;;  %v363_v7 = vld [vmem:[#allocation2 + $0x8] sm:$0xff]   ;;  %vm141_vm1 = vcmask 261120   ;;  %v364_v30 = vld [vmem:[#allocation5] sm:$0xff]   ;;  %v457_v50 = vmov 0  }
  0x28   :  { %341 = vmatprep.subr.bf16.mxu1 %v454_v1  ;;  %345 = vmatprep.mubr.msk.bf16.mxu1 %vm455_vm0, %v454_v1  ;;  %v88_v5 = vshrl.u32 %v87_v0, 7  ;;  %v53_v9 = vld [vmem:[%s572_s0] sm:$0x1]  ;;  %v54_v10 = vld [vmem:[%s572_s0 + $0x1] sm:$0x1]  ;;  %v365_v31 = vld [vmem:[#allocation5 + $0x8] sm:$0xff]  }
  0x29   :  { %v86_v4 = vunpack.c.0.s8 %v85_v3  ;;  %334 = vmatpush3.bf16.msra.mxu0 %v362_v6  ;;  %v55_v11 = vld [vmem:[%s572_s0 + $0x2] sm:$0x1]  ;;  %v56_v12 = vld [vmem:[%s572_s0 + $0x3] sm:$0x1]  ;;  %v57_v13 = vld [vmem:[%s572_s0 + $0x4] sm:$0x1]  ;;  %v80_v15 = vcombine.low %v53_v9, %v54_v10  ;;  %342 = vmatpush3.bf16.msra.mxu1 %v364_v30 }
  0x2a   :  { %335 = vmatprep.subr.bf16.mxu0 %v454_v1  ;;  %v58_v14 = vld [vmem:[%s572_s0 + $0x5] sm:$0x1]  ;;  %v59_v16 = vld [vmem:[%s572_s0 + $0x6] sm:$0x1]  ;;  %v60_v17 = vld [vmem:[%s572_s0 + $0x7] sm:$0x1]  ;;  %v81_v18 = vcombine.low %v55_v11, %v56_v12  ;;  %343 = vmatprep.subr.bf16.mxu1 %v454_v1 }
  0x2b   :  { %v89_v8 = vsub.s32 %v86_v4, %v88_v5  ;;  %v82_v19 = vcombine.low %v57_v13, %v58_v14  ;;  %v83_v20 = vcombine.low %v59_v16, %v60_v17  ;;  %v319_v32 = vld [vmem:[%s574_s2] ss:$0 sm:$0xff]  ;;  %360 = vset.pattern.permute.xlu0 %v457_v50  ;;  %361 = vset.pattern.permute.xlu1 %v457_v50  ;;  %v279_v59 = vld [vmem:[%s577_s5 + $0x8] sm:$0xff]  ;;  %v277_v62 = vand.u32 127, %v87_v0 }
  0x2c   :  { %v323_v42 = vld [vmem:[%s576_s4] ss:$0 sm:$0xff] }
  0x2d   :  { %v90_v21 = vrot.slane %v80_v15, %v89_v8  ;;  %336 = vmatpush3.bf16.msra.mxu0 %v363_v7  ;;  %v97_v22 = vrot.slane %v81_v18, %v89_v8  ;;  %v104_v23 = vrot.slane %v82_v19, %v89_v8  ;;  %v111_v24 = vrot.slane %v83_v20, %v89_v8  ;;  %v278_v49 = vld [vmem:[%s577_s5] sm:$0xff] }
  0x2e   :  { %344 = vmatpush3.bf16.msra.mxu1 %v365_v31  ;;  %vm296_vm4 = vcmp.eq.s32.totalorder %v277_v62, 127 }
  0x2f   :  { %v112_v25 = vcombine.low %v90_v21, %v97_v22  ;;  %v113_v26 = vcombine.low %v104_v23, %v111_v24 }
  0x31   :  { %v120_v27 = vrot.slane %v112_v25, %v89_v8  ;;  %v127_v28 = vrot.slane %v113_v26, %v89_v8 }
  0x33   :  { %v128_v29 = vcombine.low %v120_v27, %v127_v28 }
  0x35   :  { %338 = vmatmul.mubr.msk.bf16.vlgmr.msra.gmra.mrb[0].mxu0 %vm141_vm1, %v128_v29 }
 0x108   :  { %v179_v33 = vpop.f32.mrb[0].mxu0 }
 0x109   :  { %v180_v34 = vadd.f32 %v319_v32, %v179_v33  ;;  %v339_v35 = vpop.f32.mrb[1].mxu0 }
 0x10a   :  { %v182_v36 = vpop.f32.mrb[2].mxu0 }
 0x10b   :  { %v183_v37 = vadd.f32 %v319_v32, %v182_v36  ;;  %v340_v38 = vpop.f32.mrb[3].mxu0  ;;  %366 = vtanh.f32 %v180_v34 }
 0x10d   :  { %368 = vtanh.f32 %v183_v37 }
 0x115   :  { %v367_v39 = vpop.eup %366 }
 0x117   :  { %v369_v40 = vpop.eup %368 }
 0x118   :  { %v188_v41 = vpack.c.bf16 %v369_v40, %v367_v39 }
 0x11a   :  { %346 = vmatmul.mubr.msk.bf16.vlgmr.msra.gmra.mrb[0].mxu1 %vm141_vm1, %v188_v41 }
 0x1ed   :  { %v249_v43 = vpop.f32.mrb[0].mxu1 }
 0x1ee   :  { %v250_v44 = vadd.f32 %v323_v42, %v249_v43  ;;  %v347_v45 = vpop.f32.mrb[1].mxu1 }
 0x1ef   :  { %v252_v46 = vpop.f32.mrb[2].mxu1 }
 0x1f0   :  { %256 = vmax.xlane.f32.xlu0 %v250_v44  ;;  %v348_v47 = vpop.f32.mrb[3].mxu1  ;;  %v253_v48 = vadd.f32 %v323_v42, %v252_v46 }
 0x1f4   :  { %258 = vmax.xlane.f32.xlu0 %v253_v48 }
 0x20a   :  { %281 = vperm.xlu0 %360, %v278_v49  }
 0x27d   :  { %v257_v51 = vpop.xlane.xlu0 %256 }
 0x27e   :  { %v260_v52 = vsub.f32 %v250_v44, %v257_v51 }
 0x280   :  { %v262_v53 = vmul.f32 1.442695, %v260_v52 }
 0x281   :  { %v259_v54 = vpop.xlane.xlu0 %258 }
 0x282   :  { %v261_v55 = vsub.f32 %v253_v48, %v259_v54  ;;  %370 = vpow2.f32 %v262_v53 }
 0x284   :  { %v264_v56 = vmul.f32 1.442695, %v261_v55 }
 0x286   :  { %372 = vpow2.f32 %v264_v56 }
 0x289   :  { %v282_v63 = vpop.permute.xlu0 %281 }
 0x28a   :  { %vm286_vm2 = vcmp.eq.s32.totalorder %v277_v62, %v282_v63 }
 0x28c   :  { %v371_v57 = vpop.eup %370 }
 0x28d   :  { %266 = vadd.xlane.f32.xlu1 %v371_v57 }
 0x290   :  { %v373_v58 = vpop.eup %372 }
 0x291   :  { %268 = vadd.xlane.f32.xlu1 %v373_v58 }
 0x2a2   :  { %284 = vperm.xlu1 %361, %v279_v59  }
 0x31a   :  { %v267_v60 = vpop.xlane.xlu1 %266 }
 0x31b   :  { %374 = vlog2.f32 %v267_v60 }
 0x31e   :  { %v269_v61 = vpop.xlane.xlu1 %268 }
 0x31f   :  { %376 = vlog2.f32 %v269_v61 }
 0x322   :  { %v285_v4 = vpop.permute.xlu1 %284 }
 0x323   :  { %vm287_vm3 = vcmp.eq.s32.totalorder %v277_v62, %v285_v4 }
 0x325   :  { %v375_v1 = vpop.eup %374 }
 0x326   :  { %v271_v2 = vmul.f32 0.6931472, %v375_v1 }
 0x328   :  { %v274_v3 = vsub.f32 %v260_v52, %v271_v2 }
 0x329   :  { %v377_v5 = vpop.eup %376 }
 0x32a   :  { %v273_v6 = vmul.f32 0.6931472, %v377_v5  ;;  %v288_v7 = vsel %vm286_vm2, %v274_v3, 0.0 }
 0x32b   :  { %290 = vadd.xlane.f32.xlu1 %v288_v7 }
 0x32c   :  { %v275_v8 = vsub.f32 %v261_v55, %v273_v6 }
 0x32e   :  { %v289_v9 = vsel %vm287_vm3, %v275_v8, 0.0 }
 0x32f   :  { %292 = vadd.xlane.f32.xlu0 %v289_v9 }
 0x3b8   :  { %v291_v10 = vpop.xlane.xlu1 %290 }
 0x3b9   :  { %v294_v11 = vsub.f32 0.0, %v291_v10 }
 0x3bb   :  { %v297_v12 = vsel %vm296_vm4, %v294_v11, %v250_v44 }
 0x3bc   :  { %299 = vst [vmem:[#allocation7] sm:$0xff] %v297_v12  ;;  %v293_v0 = vpop.xlane.xlu0 %292 }
 0x3bd   :  { %v295_v13 = vsub.f32 0.0, %v293_v0 }
 0x3bf   :  { %v298_v14 = vsel %vm296_vm4, %v295_v13, %v253_v48 }
 0x3c0   :  { %300 = vst [vmem:[#allocation7 + $0x8] sm:$0xff] %v298_v14 }
 0x3c1   :  { %305 = vsyncadd [#allocation4], 224  ;;  %s458_s5 = smov [#allocation7]  }
 0x3c2   :  { %s306_s18 = sshll.u32 %s458_s5, 4  ;;  %s307_s18 = int_to_ptr.vmem [resolvable:$true] %s306_s18 }
 0x3c3   :  { %s422_s19 = scalar_lea.vmem %s307_s18, 32  ;;  %s426_s20 = scalar_lea.vmem %s307_s18, 256 }
 0x3c4   :  { %p423_p2 = scmp.ne.s32.totalorder %s307_s18, %s422_s19  ;;  %p427_p3 = scmp.lt.s32.totalorder %s307_s18, %s307_s18 }
 0x3c5   :  { %p428_p4 = scmp.lt.s32.totalorder %s426_s20, %s422_s19 }
 0x3c7   :  { %p429_p5 = por %p428_p4, %p427_p3 }
 0x3c9   :  { %p430_p6 = pnand %p429_p5, %p423_p2 }
 0x3cb   :  { %433 = shalt.err (!%p430_p6)
}
 0x3cc   :  { %s434_s3 = scalar_lea.hbm %s578_s6, 32 }
 0x3cd   :  { %p435_p7 = scmp.ne.s32.totalorder %s578_s6, %s434_s3  ;;  %p438_p8 = scmp.lt.u32.totalorder %s434_s3, %s578_s6 }
 0x3cf   :  { %p440_p9 = pnand %p438_p8, %p435_p7 }
 0x3d1   :  { %443 = shalt.err (!%p440_p9)
}
 0x3d2   :  { %s459_s26 = smov 32   ;;  %s460_s27 = smov 2  }
 0x3d3   :  { %312 = dma.vmem_to_hbm [thread:$0]  %s307_s18, 32, %s578_s6, [#allocation4], %s459_s26, %s459_s26, %s460_s27  }
 0x3d4   :  { %448 = dma.done.wait [#allocation4], 256  }
 0x3d5   :  { %449 = vsyncadd [#allocation4], 4294967040 }
 0x3d6   :  { %316 = vsyncpa [#allocation3], 1 }
 0x3d7   :  { %317 = vsyncpa [#allocation6], 1 }
 0x3d8   :  { %318 = vsyncpa [#allocation4], 1 }

// kernel: tpu_custom_call.1
= control target key start
LH: loop header
LB: loop body
LE: loop exit
PB: predicated region body
PF: predicated region fallthrough
CT: control target
= control target key end

     0   :  { %11 = vsyncpa [#allocation3], 0  ;;  %s572_s0 = inlined_call_operand.vmem [shape: bf16[2,32], index: 0, kind: input, shape index: {}]   ;;  %s573_s1 = inlined_call_operand.hbm [shape: bf16[32,32], index: 1, kind: input, shape index: {}]   ;;  %s574_s2 = inlined_call_operand.vmem [shape: f32[1,32], index: 2, kind: input, shape index: {}]   ;;  %s575_s3 = inlined_call_operand.hbm [shape: bf16[32,128], index: 3, kind: input, shape index: {}]   ;;  %s576_s4 = inlined_call_operand.vmem [shape: f32[1,128], index: 4, kind: input, shape index: {}]   ;;  %s577_s5 = inlined_call_operand.vmem [shape: s32[2,1], index: 5, kind: input, shape index: {}]   ;;  %s578_s6 = inlined_call_operand.hbm [shape: f32[2,128], index: 6, kind: output, shape index: {}]  }
   0x1   :  { %12 = vsyncpa [#allocation6], 0 }
   0x2   :  { %13 = vsyncpa [#allocation4], 0  ;;  %s450_s21 = smov [#allocation2]   ;;  %s378_s25 = scalar_lea.hbm %s573_s1, 256 }
   0x3   :  { %s21_s22 = sshll.u32 %s450_s21, 4  ;;  %p379_p0 = scmp.ne.s32.totalorder %s573_s1, %s378_s25  ;;  %s22_s22 = int_to_ptr.vmem [resolvable:$true] %s21_s22 }
   0x4   :  { %p382_p1 = scmp.lt.u32.totalorder %s378_s25, %s573_s1 }
   0x6   :  { %p384_p2 = pnand %p382_p1, %p379_p0 }
   0x8   :  { %387 = shalt.err (!%p384_p2)
}
   0x9   :  { %s388_s30 = scalar_lea.vmem %s22_s22, 256  ;;  %p393_p4 = scmp.lt.s32.totalorder %s22_s22, %s22_s22 }
   0xa   :  { %p389_p3 = scmp.ne.s32.totalorder %s22_s22, %s388_s30  ;;  %p394_p5 = scmp.lt.s32.totalorder %s388_s30, %s388_s30 }
   0xc   :  { %p395_p6 = por %p394_p5, %p393_p4 }
   0xe   :  { %p396_p7 = pnand %p395_p6, %p389_p3 }
  0x10   :  { %399 = shalt.err (!%p396_p7)
}
  0x11   :  { %s451_s7 = smov 64   ;;  %s452_s8 = smov 4  }
  0x12   :  { %27 = dma.hbm_to_vmem [thread:$0]  %s573_s1, 256, %s22_s22, [#allocation3], %s451_s7, %s451_s7, %s452_s8  }
  0x13   :  { %s453_s11 = smov [#allocation5]   ;;  %s400_s15 = scalar_lea.hbm %s575_s3, 256 }
  0x14   :  { %s35_s12 = sshll.u32 %s453_s11, 4  ;;  %p401_p8 = scmp.ne.s32.totalorder %s575_s3, %s400_s15  ;;  %s36_s12 = int_to_ptr.vmem [resolvable:$true] %s35_s12 }
  0x15   :  { %p404_p9 = scmp.lt.u32.totalorder %s400_s15, %s575_s3 }
  0x17   :  { %p406_p10 = pnand %p404_p9, %p401_p8 }
  0x19   :  { %409 = shalt.err (!%p406_p10)
}
  0x1a   :  { %s410_s20 = scalar_lea.vmem %s36_s12, 256  ;;  %p415_p12 = scmp.lt.s32.totalorder %s36_s12, %s36_s12 }
  0x1b   :  { %p411_p11 = scmp.ne.s32.totalorder %s36_s12, %s410_s20  ;;  %p416_p13 = scmp.lt.s32.totalorder %s410_s20, %s410_s20 }
  0x1d   :  { %p417_p0 = por %p416_p13, %p415_p12 }
  0x1f   :  { %p418_p1 = pnand %p417_p0, %p411_p11 }
  0x21   :  { %421 = shalt.err (!%p418_p1)
}
  0x22   :  { %41 = dma.hbm_to_vmem [thread:$0]  %s575_s3, 256, %s36_s12, [#allocation6], %s451_s7, %s451_s7, %s452_s8  }
  0x23   :  { %444 = dma.done.wait [#allocation3], 256  }
  0x24   :  { %445 = vsyncadd [#allocation3], 4294967040 }
  0x25   :  { %446 = dma.done.wait [#allocation6], 256  }
  0x26   :  { %447 = vsyncadd [#allocation6], 4294967040  ;;  %v87_v0 = vlaneseq  ;;  %v454_v1 = vmov 0.0   ;;  %vm455_vm0 = vmmov 0   ;;  %v456_v2 = vmov 1966171168  }
  0x27   :  { %333 = vmatprep.subr.bf16.mxu0 %v454_v1  ;;  %337 = vmatprep.mubr.msk.bf16.mxu0 %vm455_vm0, %v454_v1  ;;  %v85_v3 = vunpack.c.l.s4 %v456_v2  ;;  %v362_v6 = vld [vmem:[#allocation2] sm:$0xff]   ;;  %v363_v7 = vld [vmem:[#allocation2 + $0x8] sm:$0xff]   ;;  %vm141_vm1 = vcmask 261120   ;;  %v364_v30 = vld [vmem:[#allocation5] sm:$0xff]   ;;  %v457_v50 = vmov 0  }
  0x28   :  { %341 = vmatprep.subr.bf16.mxu1 %v454_v1  ;;  %345 = vmatprep.mubr.msk.bf16.mxu1 %vm455_vm0, %v454_v1  ;;  %v88_v5 = vshrl.u32 %v87_v0, 7  ;;  %v53_v9 = vld [vmem:[%s572_s0] sm:$0x1]  ;;  %v54_v10 = vld [vmem:[%s572_s0 + $0x1] sm:$0x1]  ;;  %v365_v31 = vld [vmem:[#allocation5 + $0x8] sm:$0xff]  }
  0x29   :  { %v86_v4 = vunpack.c.0.s8 %v85_v3  ;;  %334 = vmatpush3.bf16.msra.mxu0 %v362_v6  ;;  %v55_v11 = vld [vmem:[%s572_s0 + $0x2] sm:$0x1]  ;;  %v56_v12 = vld [vmem:[%s572_s0 + $0x3] sm:$0x1]  ;;  %v57_v13 = vld [vmem:[%s572_s0 + $0x4] sm:$0x1]  ;;  %v80_v15 = vcombine.low %v53_v9, %v54_v10  ;;  %342 = vmatpush3.bf16.msra.mxu1 %v364_v30 }
  0x2a   :  { %335 = vmatprep.subr.bf16.mxu0 %v454_v1  ;;  %v58_v14 = vld [vmem:[%s572_s0 + $0x5] sm:$0x1]  ;;  %v59_v16 = vld [vmem:[%s572_s0 + $0x6] sm:$0x1]  ;;  %v60_v17 = vld [vmem:[%s572_s0 + $0x7] sm:$0x1]  ;;  %v81_v18 = vcombine.low %v55_v11, %v56_v12  ;;  %343 = vmatprep.subr.bf16.mxu1 %v454_v1 }
  0x2b   :  { %v89_v8 = vsub.s32 %v86_v4, %v88_v5  ;;  %v82_v19 = vcombine.low %v57_v13, %v58_v14  ;;  %v83_v20 = vcombine.low %v59_v16, %v60_v17  ;;  %v319_v32 = vld [vmem:[%s574_s2] ss:$0 sm:$0xff]  ;;  %360 = vset.pattern.permute.xlu0 %v457_v50  ;;  %361 = vset.pattern.permute.xlu1 %v457_v50  ;;  %v279_v59 = vld [vmem:[%s577_s5 + $0x8] sm:$0xff]  ;;  %v277_v62 = vand.u32 127, %v87_v0 }
  0x2c   :  { %v323_v42 = vld [vmem:[%s576_s4] ss:$0 sm:$0xff] }
  0x2d   :  { %v90_v21 = vrot.slane %v80_v15, %v89_v8  ;;  %336 = vmatpush3.bf16.msra.mxu0 %v363_v7  ;;  %v97_v22 = vrot.slane %v81_v18, %v89_v8  ;;  %v104_v23 = vrot.slane %v82_v19, %v89_v8  ;;  %v111_v24 = vrot.slane %v83_v20, %v89_v8  ;;  %v278_v49 = vld [vmem:[%s577_s5] sm:$0xff] }
  0x2e   :  { %344 = vmatpush3.bf16.msra.mxu1 %v365_v31  ;;  %vm296_vm4 = vcmp.eq.s32.totalorder %v277_v62, 127 }
  0x2f   :  { %v112_v25 = vcombine.low %v90_v21, %v97_v22  ;;  %v113_v26 = vcombine.low %v104_v23, %v111_v24 }
  0x31   :  { %v120_v27 = vrot.slane %v112_v25, %v89_v8  ;;  %v127_v28 = vrot.slane %v113_v26, %v89_v8 }
  0x33   :  { %v128_v29 = vcombine.low %v120_v27, %v127_v28 }
  0x35   :  { %338 = vmatmul.mubr.msk.bf16.vlgmr.msra.gmra.mrb[0].mxu0 %vm141_vm1, %v128_v29 }
 0x108   :  { %v179_v33 = vpop.f32.mrb[0].mxu0 }
 0x109   :  { %v180_v34 = vadd.f32 %v319_v32, %v179_v33  ;;  %v339_v35 = vpop.f32.mrb[1].mxu0 }
 0x10a   :  { %v182_v36 = vpop.f32.mrb[2].mxu0 }
 0x10b   :  { %v183_v37 = vadd.f32 %v319_v32, %v182_v36  ;;  %v340_v38 = vpop.f32.mrb[3].mxu0  ;;  %366 = vtanh.f32 %v180_v34 }
 0x10d   :  { %368 = vtanh.f32 %v183_v37 }
 0x115   :  { %v367_v39 = vpop.eup %366 }
 0x117   :  { %v369_v40 = vpop.eup %368 }
 0x118   :  { %v188_v41 = vpack.c.bf16 %v369_v40, %v367_v39 }
 0x11a   :  { %346 = vmatmul.mubr.msk.bf16.vlgmr.msra.gmra.mrb[0].mxu1 %vm141_vm1, %v188_v41 }
 0x1ed   :  { %v249_v43 = vpop.f32.mrb[0].mxu1 }
 0x1ee   :  { %v250_v44 = vadd.f32 %v323_v42, %v249_v43  ;;  %v347_v45 = vpop.f32.mrb[1].mxu1 }
 0x1ef   :  { %v252_v46 = vpop.f32.mrb[2].mxu1 }
 0x1f0   :  { %256 = vmax.xlane.f32.xlu0 %v250_v44  ;;  %v348_v47 = vpop.f32.mrb[3].mxu1  ;;  %v253_v48 = vadd.f32 %v323_v42, %v252_v46 }
 0x1f4   :  { %258 = vmax.xlane.f32.xlu0 %v253_v48 }
 0x20a   :  { %281 = vperm.xlu0 %360, %v278_v49  }
 0x27d   :  { %v257_v51 = vpop.xlane.xlu0 %256 }
 0x27e   :  { %v260_v52 = vsub.f32 %v250_v44, %v257_v51 }
 0x280   :  { %v262_v53 = vmul.f32 1.442695, %v260_v52 }
 0x281   :  { %v259_v54 = vpop.xlane.xlu0 %258 }
 0x282   :  { %v261_v55 = vsub.f32 %v253_v48, %v259_v54  ;;  %370 = vpow2.f32 %v262_v53 }
 0x284   :  { %v264_v56 = vmul.f32 1.442695, %v261_v55 }
 0x286   :  { %372 = vpow2.f32 %v264_v56 }
 0x289   :  { %v282_v63 = vpop.permute.xlu0 %281 }
 0x28a   :  { %vm286_vm2 = vcmp.eq.s32.totalorder %v277_v62, %v282_v63 }
 0x28c   :  { %v371_v57 = vpop.eup %370 }
 0x28d   :  { %266 = vadd.xlane.f32.xlu1 %v371_v57 }
 0x290   :  { %v373_v58 = vpop.eup %372 }
 0x291   :  { %268 = vadd.xlane.f32.xlu1 %v373_v58 }
 0x2a2   :  { %284 = vperm.xlu1 %361, %v279_v59  }
 0x31a   :  { %v267_v60 = vpop.xlane.xlu1 %266 }
 0x31b   :  { %374 = vlog2.f32 %v267_v60 }
 0x31e   :  { %v269_v61 = vpop.xlane.xlu1 %268 }
 0x31f   :  { %376 = vlog2.f32 %v269_v61 }
 0x322   :  { %v285_v4 = vpop.permute.xlu1 %284 }
 0x323   :  { %vm287_vm3 = vcmp.eq.s32.totalorder %v277_v62, %v285_v4 }
 0x325   :  { %v375_v1 = vpop.eup %374 }
 0x326   :  { %v271_v2 = vmul.f32 0.6931472, %v375_v1 }
 0x328   :  { %v274_v3 = vsub.f32 %v260_v52, %v271_v2 }
 0x329   :  { %v377_v5 = vpop.eup %376 }
 0x32a   :  { %v273_v6 = vmul.f32 0.6931472, %v377_v5  ;;  %v288_v7 = vsel %vm286_vm2, %v274_v3, 0.0 }
 0x32b   :  { %290 = vadd.xlane.f32.xlu1 %v288_v7 }
 0x32c   :  { %v275_v8 = vsub.f32 %v261_v55, %v273_v6 }
 0x32e   :  { %v289_v9 = vsel %vm287_vm3, %v275_v8, 0.0 }
 0x32f   :  { %292 = vadd.xlane.f32.xlu0 %v289_v9 }
 0x3b8   :  { %v291_v10 = vpop.xlane.xlu1 %290 }
 0x3b9   :  { %v294_v11 = vsub.f32 0.0, %v291_v10 }
 0x3bb   :  { %v297_v12 = vsel %vm296_vm4, %v294_v11, %v250_v44 }
 0x3bc   :  { %299 = vst [vmem:[#allocation7] sm:$0xff] %v297_v12  ;;  %v293_v0 = vpop.xlane.xlu0 %292 }
 0x3bd   :  { %v295_v13 = vsub.f32 0.0, %v293_v0 }
 0x3bf   :  { %v298_v14 = vsel %vm296_vm4, %v295_v13, %v253_v48 }
 0x3c0   :  { %300 = vst [vmem:[#allocation7 + $0x8] sm:$0xff] %v298_v14 }
 0x3c1   :  { %305 = vsyncadd [#allocation4], 224  ;;  %s458_s5 = smov [#allocation7]  }
 0x3c2   :  { %s306_s18 = sshll.u32 %s458_s5, 4  ;;  %s307_s18 = int_to_ptr.vmem [resolvable:$true] %s306_s18 }
 0x3c3   :  { %s422_s19 = scalar_lea.vmem %s307_s18, 32  ;;  %s426_s20 = scalar_lea.vmem %s307_s18, 256 }
 0x3c4   :  { %p423_p2 = scmp.ne.s32.totalorder %s307_s18, %s422_s19  ;;  %p427_p3 = scmp.lt.s32.totalorder %s307_s18, %s307_s18 }
 0x3c5   :  { %p428_p4 = scmp.lt.s32.totalorder %s426_s20, %s422_s19 }
 0x3c7   :  { %p429_p5 = por %p428_p4, %p427_p3 }
 0x3c9   :  { %p430_p6 = pnand %p429_p5, %p423_p2 }
 0x3cb   :  { %433 = shalt.err (!%p430_p6)
}
 0x3cc   :  { %s434_s3 = scalar_lea.hbm %s578_s6, 32 }
 0x3cd   :  { %p435_p7 = scmp.ne.s32.totalorder %s578_s6, %s434_s3  ;;  %p438_p8 = scmp.lt.u32.totalorder %s434_s3, %s578_s6 }
 0x3cf   :  { %p440_p9 = pnand %p438_p8, %p435_p7 }
 0x3d1   :  { %443 = shalt.err (!%p440_p9)
}
 0x3d2   :  { %s459_s26 = smov 32   ;;  %s460_s27 = smov 2  }
 0x3d3   :  { %312 = dma.vmem_to_hbm [thread:$0]  %s307_s18, 32, %s578_s6, [#allocation4], %s459_s26, %s459_s26, %s460_s27  }
 0x3d4   :  { %448 = dma.done.wait [#allocation4], 256  }
 0x3d5   :  { %449 = vsyncadd [#allocation4], 4294967040 }
 0x3d6   :  { %316 = vsyncpa [#allocation3], 1 }
 0x3d7   :  { %317 = vsyncpa [#allocation6], 1 }
 0x3d8   :  { %318 = vsyncpa [#allocation4], 1 }

</bundles_post_ra>
